<compile_context>
chip_gen: v6e
topology: v6e:2x2x1
jax: 0.10.0
libtpu: 0.0.40
codegen_flags: <defaults>
</compile_context>

<pallas_src>
import functools

import numpy as np
import jax
import jax.numpy as jnp
from jax import lax
from jax.experimental import pallas as pl
from jax.experimental.pallas import tpu as pltpu


# ---------------------------------------------------------------------------
# x-path kernel (parallel over (t, b)):  px[t, b] = W_x @ im2col(x[t, b]) + bias
# ---------------------------------------------------------------------------
def _xpath_kernel(xcol_ref, wx_ref, bias_ref, out_ref):
    # (C4, k*k*Cin) @ (k*k*Cin, HW) -> (C4, HW), f32 accumulation on the MXU.
    out_ref[0, 0] = (
        jnp.dot(wx_ref[...], xcol_ref[0, 0], preferred_element_type=jnp.float32)
        + bias_ref[...])


# ---------------------------------------------------------------------------
# Recurrent kernel: one grid step = one (sample, timestep).
#   px     : (1, 1, 4Cf, HW)  precomputed x-path pre-activation (incl. bias)
#   w_h    : (4Cf, k*k*Cf)    h-path conv weight, tap-major columns
#   masks  : (k*k, HW)        0/1 boundary masks for each tap shift
#   gamma/beta : (4Cf, 1)     GroupNorm affine (per channel, on sublanes)
#   oh     : (1, 1, Cf, HW)   stacked hidden output for this (t, b)
#   oc     : (1, Cf, HW)      final cell; also serves as the cell-state carry
#   hx     : (Cf, HW)         hidden-state carry (VMEM scratch)
# ---------------------------------------------------------------------------
def _clstm_step_kernel(px_ref, wh_ref, mask_ref, gamma_ref, beta_ref,
                       oh_ref, oc_ref, hx_ref,
                       *, Cf, G, Cg, eps, shifts):
    t = pl.program_id(1)

    # hidden_state=None path: zero-init the carries at the first timestep of
    # every sample.  (Runs once per sample; nothing else is re-zeroed per step.)
    @pl.when(t == 0)
    def _init():
        hx_ref[...] = jnp.zeros_like(hx_ref)
        oc_ref[...] = jnp.zeros_like(oc_ref)   # cell carry lives in the output block

    h = hx_ref[...]                                         # (Cf, HW) f32

    # im2col of h: each tap is an XLU lane roll of the flattened spatial axis,
    # with out-of-image lanes zeroed by a precomputed mask.  Stacked along
    # sublanes and fed to ONE fused MXU matmul with K = k*k*Cf.
    parts = []
    for idx, sh in enumerate(shifts):
        hs = h if sh == 0 else pltpu.roll(h, shift=sh, axis=1)
        parts.append(hs * mask_ref[idx:idx + 1, :])
    hcol = jnp.concatenate(parts, axis=0).astype(wh_ref.dtype)   # (k*k*Cf, HW)

    gates = px_ref[0, 0] + jnp.dot(wh_ref[...], hcol,
                                   preferred_element_type=jnp.float32)  # (4Cf, HW)

    # GroupNorm: per group, two-pass variance (E[(x-mu)^2]) + per-channel affine.
    # Computed entirely on values -- no scratch round-trip, one concat at the end.
    gn_parts = []
    for g in range(G):
        lo = g * Cg
        gs = gates[lo:lo + Cg, :]
        mu = jnp.mean(gs, axis=(0, 1), keepdims=True)
        var = jnp.mean((gs - mu) ** 2, axis=(0, 1), keepdims=True)
        inv = lax.rsqrt(var + eps)
        gn_parts.append((gs - mu) * inv * gamma_ref[lo:lo + Cg, :]
                        + beta_ref[lo:lo + Cg, :])
    gn = jnp.concatenate(gn_parts, axis=0)                  # (4Cf, HW)

    # Gate nonlinearities + LSTM state update (f32 state / gate math).
    ig = jax.nn.sigmoid(gn[0:Cf, :])
    fg = jax.nn.sigmoid(gn[Cf:2 * Cf, :])
    cg = jnp.tanh(gn[2 * Cf:3 * Cf, :])
    og = jax.nn.sigmoid(gn[3 * Cf:4 * Cf, :])

    cy = fg * oc_ref[0] + ig * cg
    hy = og * jnp.tanh(cy)

    oh_ref[0, 0] = hy          # stacked hidden output for this (t, b)
    oc_ref[0] = cy             # carried cell state; last write = returned cell
    hx_ref[...] = hy           # hidden carry for the next timestep


# ---------------------------------------------------------------------------
# Static helpers.
# ---------------------------------------------------------------------------
def _boundary_masks(H, W, k, pad):
    """(k*k, H*W) 0/1 masks: 1 where the shifted tap stays inside the image."""
    HW = H * W
    y = np.arange(HW) // W
    x = np.arange(HW) % W
    masks = np.zeros((k * k, HW), np.float32)
    for ky in range(k):
        for kx in range(k):
            dy, dx = ky - pad, kx - pad
            ok = (y + dy >= 0) & (y + dy < H) & (x + dx >= 0) & (x + dx < W)
            masks[ky * k + kx] = ok.astype(np.float32)
    return masks


def _roll_probe_kernel(x_ref, o_ref):
    o_ref[...] = pltpu.roll(x_ref[...], shift=1, axis=1)


@functools.lru_cache(maxsize=None)
def _roll_is_numpy_convention():
    """pltpu.roll is expected to match np.roll; probe once so the tap shifts are
    correct regardless of the rotate direction convention of this build."""
    x = jnp.arange(8 * 128, dtype=jnp.float32).reshape(8, 128)
    y = pl.pallas_call(_roll_probe_kernel,
                       out_shape=jax.ShapeDtypeStruct((8, 128), jnp.float32))(x)
    return bool(jnp.array_equal(y, jnp.roll(x, 1, axis=1)))


# ---------------------------------------------------------------------------
# Wrapper: full CLSTM_cell.forward (hidden_state=None, given inputs).
# ---------------------------------------------------------------------------
def clstm_cell_forward(x_seq, w, b, gamma, beta, *,
                       num_features, filter_size,
                       matmul_dtype=jnp.bfloat16):
    """ConvLSTM cell forward.

    x_seq : (S, B, Cin, H, W) f32    (PyTorch layout, sequence major)
    w     : (4*Cf, Cin+Cf, k, k)     nn.Conv2d OIHW weight
    b     : (4*Cf,)                  conv bias
    gamma, beta : (4*Cf,)            GroupNorm affine parameters
    Returns (outputs (S, B, Cf, H, W), (hy, cy)) like CLSTM_cell.forward.
    """
    S, B, Cin, H, W = x_seq.shape
    Cf = num_features
    C4 = 4 * Cf
    k = filter_size
    pad = (k - 1) // 2
    HW = H * W
    G = C4 // 32
    Cg = C4 // G
    eps = 1e-5
    assert k % 2 == 1, "even filter_size would not match the module's SAME padding"
    assert C4 % 32 == 0, "GroupNorm(4*num_features // 32, ...) requires 4*Cf % 32 == 0"
    f32 = jnp.float32

    # Split the conv weight: x path (hoisted out of the loop) / h path (recurrent).
    w_x = jnp.transpose(w[:, :Cin], (0, 2, 3, 1)).reshape(C4, k * k * Cin)
    w_h = jnp.transpose(w[:, Cin:], (0, 2, 3, 1)).reshape(C4, k * k * Cf)
    w_x = w_x.astype(matmul_dtype)
    w_h = w_h.astype(matmul_dtype)
    bias_c = b.reshape(C4, 1).astype(f32)
    gamma_c = gamma.reshape(C4, 1).astype(f32)
    beta_c = beta.reshape(C4, 1).astype(f32)

    # ---- x path: im2col (XLA layout plumbing, outside the serial loop) + a
    # fully parallel Pallas matmul over (S, B).  Output layout (S, B, 4Cf, HW)
    # feeds the recurrent kernel directly (lane-dense, no further transpose).
    xpad = jnp.pad(x_seq, ((0, 0), (0, 0), (0, 0), (pad, pad), (pad, pad)))
    xcol = jnp.concatenate(
        [xpad[:, :, :, ky:ky + H, kx:kx + W]
         for ky in range(k) for kx in range(k)], axis=2)
    xcol = xcol.reshape(S, B, k * k * Cin, HW).astype(matmul_dtype)

    px = pl.pallas_call(
        _xpath_kernel,
        out_shape=jax.ShapeDtypeStruct((S, B, C4, HW), f32),
        grid_spec=pltpu.PrefetchScalarGridSpec(
            num_scalar_prefetch=0,
            grid=(S, B),
            in_specs=[
                pl.BlockSpec((1, 1, k * k * Cin, HW), lambda s, b_: (s, b_, 0, 0)),
                pl.BlockSpec((C4, k * k * Cin), lambda s, b_: (0, 0)),
                pl.BlockSpec((C4, 1), lambda s, b_: (0, 0)),
            ],
            out_specs=pl.BlockSpec((1, 1, C4, HW), lambda s, b_: (s, b_, 0, 0))),
        compiler_params=pltpu.CompilerParams(
            dimension_semantics=("parallel", "parallel"),
            vmem_limit_bytes=32 * 1024 * 1024),
    )(xcol, w_x, bias_c)

    # ---- recurrent part: grid=(B, S); batch parallel (megacore on v7x),
    # time serial with state carried in VMEM scratch / the oc output block.
    if _roll_is_numpy_convention():
        shifts = tuple(int((-((ky - pad) * W + (kx - pad))) % HW)
                       for ky in range(k) for kx in range(k))
    else:
        shifts = tuple(int(((ky - pad) * W + (kx - pad)) % HW)
                       for ky in range(k) for kx in range(k))
    masks = jnp.asarray(_boundary_masks(H, W, k, pad))

    kernel = functools.partial(
        _clstm_step_kernel, Cf=Cf, G=G, Cg=Cg, eps=eps, shifts=shifts)

    outs, cy = pl.pallas_call(
        kernel,
        out_shape=(jax.ShapeDtypeStruct((S, B, Cf, HW), f32),
                   jax.ShapeDtypeStruct((B, Cf, HW), f32)),
        grid_spec=pltpu.PrefetchScalarGridSpec(
            num_scalar_prefetch=0,
            grid=(B, S),
            in_specs=[
                pl.BlockSpec((1, 1, C4, HW), lambda b_, t: (t, b_, 0, 0)),  # px
                pl.BlockSpec((C4, k * k * Cf), lambda b_, t: (0, 0)),       # w_h
                pl.BlockSpec((k * k, HW), lambda b_, t: (0, 0)),            # masks
                pl.BlockSpec((C4, 1), lambda b_, t: (0, 0)),                # gamma
                pl.BlockSpec((C4, 1), lambda b_, t: (0, 0)),                # beta
            ],
            out_specs=[
                pl.BlockSpec((1, 1, Cf, HW), lambda b_, t: (t, b_, 0, 0)),  # stacked h
                pl.BlockSpec((1, Cf, HW), lambda b_, t: (b_, 0, 0)),        # final cell
            ],
            scratch_shapes=[pltpu.VMEM((Cf, HW), f32)]),                    # hx carry
        compiler_params=pltpu.CompilerParams(
            dimension_semantics=("parallel", "arbitrary"),
            vmem_limit_bytes=32 * 1024 * 1024),
    )(px, w_h, masks, gamma_c, beta_c)

    outputs = outs.reshape(S, B, Cf, H, W)
    cy = cy.reshape(B, Cf, H, W)
    hy = outputs[-1]
    return outputs, (hy, cy)


# ---------------------------------------------------------------------------
# Pure-JAX reference matching the PyTorch forward (NCHW / OIHW, like nn.Conv2d).
# ---------------------------------------------------------------------------
def ref_clstm(x_seq, w, b, gamma, beta, *, num_features, eps=1e-5):
    S, B, Cin, H, W = x_seq.shape
    Cf = num_features
    C4 = 4 * Cf
    G = C4 // 32
    Cg = C4 // G
    hx = jnp.zeros((B, Cf, H, W), jnp.float32)
    cx = jnp.zeros((B, Cf, H, W), jnp.float32)
    outs = []
    for t in range(S):
        comb = jnp.concatenate([x_seq[t], hx], axis=1)
        gates = lax.conv_general_dilated(
            comb, w, window_strides=(1, 1), padding="SAME",
            dimension_numbers=("NCHW", "OIHW", "NCHW")) + b.reshape(1, C4, 1, 1)
        g5 = gates.reshape(B, G, Cg, H, W)
        mu = jnp.mean(g5, axis=(2, 3, 4), keepdims=True)
        var = jnp.mean((g5 - mu) ** 2, axis=(2, 3, 4), keepdims=True)
        gn = ((g5 - mu) / jnp.sqrt(var + eps)).reshape(B, C4, H, W)
        gn = gn * gamma.reshape(1, C4, 1, 1) + beta.reshape(1, C4, 1, 1)
        i, f, g, o = jnp.split(gn, 4, axis=1)
        cx = jax.nn.sigmoid(f) * cx + jax.nn.sigmoid(i) * jnp.tanh(g)
        hx = jax.nn.sigmoid(o) * jnp.tanh(cx)
        outs.append(hx)
    return jnp.stack(outs), hx, cx


if __name__ == "__main__":
    # Shapes consistent with the module: shape=(16,16), input_channels=4,
    # filter_size=3, num_features=32, seq_len=8, batch=2.
    S, B, H, W = 8, 2, 16, 16
    Cin, Cf, k = 4, 32, 3
    Ct, C4 = Cin + Cf, 4 * Cf

    key = jax.random.PRNGKey(0)
    k1, k2, k3, k4, k5 = jax.random.split(key, 5)
    x = jax.random.normal(k1, (S, B, Cin, H, W), jnp.float32)
    w = 0.1 * jax.random.normal(k2, (C4, Ct, k, k), jnp.float32)   # Conv2d OIHW weight
    b = 0.1 * jax.random.normal(k3, (C4,), jnp.float32)            # Conv2d bias
    gamma = 1.0 + 0.1 * jax.random.normal(k4, (C4,), jnp.float32)  # GroupNorm weight
    beta = 0.1 * jax.random.normal(k5, (C4,), jnp.float32)         # GroupNorm bias

    r_outs, r_hy, r_cy = ref_clstm(x, w, b, gamma, beta, num_features=Cf)

    # 1) f32-operand mode: tight numerical validation against the XLA reference.
    outs, (hy, cy) = clstm_cell_forward(x, w, b, gamma, beta,
                                        num_features=Cf, filter_size=k,
                                        matmul_dtype=jnp.float32)
    jax.block_until_ready((outs, hy, cy))
    assert jnp.allclose(outs, r_outs, atol=2e-3, rtol=2e-3), "f32: stacked outputs mismatch"
    assert jnp.allclose(hy, r_hy, atol=2e-3, rtol=2e-3), "f32: final hidden mismatch"
    assert jnp.allclose(cy, r_cy, atol=2e-3, rtol=2e-3), "f32: final cell mismatch"

    # 2) bf16-operand mode (default fast path): looser tolerance accounts for
    #    bf16 rounding of the MXU operands (accumulation and state stay f32).
    outs, (hy, cy) = clstm_cell_forward(x, w, b, gamma, beta,
                                        num_features=Cf, filter_size=k)
    jax.block_until_ready((outs, hy, cy))
    assert jnp.allclose(outs, r_outs, atol=5e-2, rtol=5e-2), "bf16: stacked outputs mismatch"
    assert jnp.allclose(hy, r_hy, atol=5e-2, rtol=5e-2), "bf16: final hidden mismatch"
    assert jnp.allclose(cy, r_cy, atol=5e-2, rtol=5e-2), "bf16: final cell mismatch"

    # TODO(synk): the `inputs=None` branch is covered by passing an all-zero x_seq;
    # injecting an external (hx, cx) hidden_state would need two extra kernel inputs.
    print("KERNEL_OK")
</pallas_src>

<mosaic_0001>
module attributes {stable_mosaic.version = 11 : i64} {
  func.func @_xpath_kernel(%arg0: i32, %arg1: i32, %arg2: memref<1x1x36x256xf32, #tpu.memory_space<vmem>>, %arg3: memref<128x36xf32, #tpu.memory_space<vmem>>, %arg4: memref<128x1xf32, #tpu.memory_space<vmem>>, %arg5: memref<1x1x128x256xf32, #tpu.memory_space<vmem>>) attributes {dimension_semantics = [#tpu.dimension_semantics<parallel>, #tpu.dimension_semantics<parallel>], iteration_bounds = array<i64: 8, 2>, scalar_prefetch = 0 : i64, scratch_operands = 0 : i64, tpu.core_type = #tpu.core_type<tc>, window_params = [{transform_indices = @transform_0, window_bounds = array<i64: 1, 1, 36, 256>}, {pipeline_mode = #tpu.pipeline_mode<synchronous>, transform_indices = @transform_1, window_bounds = array<i64: 128, 36>}, {pipeline_mode = #tpu.pipeline_mode<synchronous>, transform_indices = @transform_2, window_bounds = array<i64: 128, 1>}, {transform_indices = @transform_3, window_bounds = array<i64: 1, 1, 128, 256>}]} {
    %c0 = arith.constant 0 : index
    %c0_0 = arith.constant 0 : index
    %0 = vector.load %arg3[%c0, %c0_0] : memref<128x36xf32, #tpu.memory_space<vmem>>, vector<128x36xf32>
    %c0_1 = arith.constant 0 : index
    %c0_2 = arith.constant 0 : index
    %c0_3 = arith.constant 0 : index
    %c0_4 = arith.constant 0 : index
    %1 = vector.load %arg2[%c0_1, %c0_2, %c0_3, %c0_4] : memref<1x1x36x256xf32, #tpu.memory_space<vmem>>, vector<1x1x36x256xf32>
    %2 = vector.shape_cast %1 : vector<1x1x36x256xf32> to vector<36x256xf32>
    %cst = arith.constant dense<0.000000e+00> : vector<128x256xf32>
    %3 = tpu.matmul %0, %2, %cst {dimension_numbers = #tpu.dot_dimension_numbers<[1], [0], [0], [1], [0, 0, 1, 1], [], []>} : vector<128x36xf32>, vector<36x256xf32>, vector<128x256xf32> -> vector<128x256xf32>
    %c0_5 = arith.constant 0 : index
    %c0_6 = arith.constant 0 : index
    %4 = vector.load %arg4[%c0_5, %c0_6] : memref<128x1xf32, #tpu.memory_space<vmem>>, vector<128x1xf32>
    %5 = vector.broadcast %4 : vector<128x1xf32> to vector<128x256xf32>
    %6 = arith.addf %3, %5 : vector<128x256xf32>
    %c0_7 = arith.constant 0 : index
    %c0_8 = arith.constant 0 : index
    %c0_9 = arith.constant 0 : index
    %c0_10 = arith.constant 0 : index
    %7 = vector.load %arg5[%c0_7, %c0_8, %c0_9, %c0_10] : memref<1x1x128x256xf32, #tpu.memory_space<vmem>>, vector<1x1x128x256xf32>
    %8 = vector.shape_cast %7 : vector<1x1x128x256xf32> to vector<128x256xf32>
    %9 = vector.shape_cast %6 : vector<128x256xf32> to vector<1x1x128x256xf32>
    tpu.vector_store %arg5[%c0_7, %c0_8, %c0_9, %c0_10], %9 {strides = array<i32>} : memref<1x1x128x256xf32, #tpu.memory_space<vmem>>, vector<1x1x128x256xf32>,
    return
  }
  func.func @transform_0(%arg0: i32, %arg1: i32) -> (i32, i32, i32, i32) {
    %c0_i32 = arith.constant 0 : i32
    %c0_i32_0 = arith.constant 0 : i32
    %c0_i32_1 = arith.constant 0 : i32
    return %arg0, %arg1, %c0_i32, %c0_i32_0 : i32, i32, i32, i32
  }
  func.func @transform_1(%arg0: i32, %arg1: i32) -> (i32, i32) {
    %c0_i32 = arith.constant 0 : i32
    %c0_i32_0 = arith.constant 0 : i32
    %c0_i32_1 = arith.constant 0 : i32
    return %c0_i32, %c0_i32_0 : i32, i32
  }
  func.func @transform_2(%arg0: i32, %arg1: i32) -> (i32, i32) {
    %c0_i32 = arith.constant 0 : i32
    %c0_i32_0 = arith.constant 0 : i32
    %c0_i32_1 = arith.constant 0 : i32
    return %c0_i32, %c0_i32_0 : i32, i32
  }
  func.func @transform_3(%arg0: i32, %arg1: i32) -> (i32, i32, i32, i32) {
    %c0_i32 = arith.constant 0 : i32
    %c0_i32_0 = arith.constant 0 : i32
    %c0_i32_1 = arith.constant 0 : i32
    return %arg0, %arg1, %c0_i32, %c0_i32_0 : i32, i32, i32, i32
  }
}

</mosaic_0001>

<bundles_post_ra>
// kernel: tpu_custom_call.1
= control target key start
LH: loop header
LB: loop body
LE: loop exit
PB: predicated region body
PF: predicated region fallthrough
CT: control target
= control target key end

     0   :  { %8 = vsyncpa [#allocation3], 0  ;;  %s1230_s0 = inlined_call_operand.vmem [shape: f32[8,2,36,256], index: 0, kind: input, shape index: {}]   ;;  %s1231_s1 = inlined_call_operand.vmem [shape: f32[128,36], index: 1, kind: input, shape index: {}]   ;;  %s1232_s2 = inlined_call_operand.vmem [shape: f32[128,1], index: 2, kind: input, shape index: {}]   ;;  %s1233_s3 = inlined_call_operand.hbm [shape: f32[8,2,128,256], index: 3, kind: output, shape index: {}]  }
   0x1   :  { %10 = vsyncpa [#allocation3 + $0x1], 0  ;;  %s908_s12 = smov 0   ;;  %s910_s13 = smov 0  }
   0x2   :  { %s912_s14 = smov 0   ;;  %s914_s15 = smov 0  }
   0x3   :  { %s916_s16 = smov 0   ;;  %s918_s17 = smov 0  }
   0x4   :  { %s920_s18 = smov 0   ;;  %s922_s19 = smov 0  }
   0x5 LB: > { %s669_s20 = sadd.s32 4294967295, %s881_s19   ;;  %s670_s21 = sadd.s32 4294967294, %s881_s19   ;;  %s881_s19 = sphi %s922_s19, %s16_s19   ;;  %s877_s18 = sphi %s920_s18, %s1242_s18   ;;  %s873_s17 = sphi %s918_s17, %s1241_s17   ;;  %s869_s16 = sphi %s916_s16, %s1240_s16   ;;  %s865_s15 = sphi %s914_s15, %s1239_s15   ;;  %s861_s14 = sphi %s912_s14, %s1238_s14   ;;  %s857_s13 = sphi %s910_s13, %s1237_s13   ;;  %s853_s12 = sphi %s908_s12, %s1236_s12  }
   0x6   : > { %s25_s22 = sadd.s32 1, %s873_s17  ;;  %s28_s23 = sadd.s32 1, %s877_s18 }
   0x7   : > { %p26_p0 = scmp.ge.s32.totalorder %s25_s22, 2  ;;  %p117_p1 = scmp.ne.s32.totalorder %s861_s14, %s857_s13 }
   0x8   : > { %p118_p2 = scmp.eq.s32.totalorder %s669_s20, 15  ;;  %p123_p5 = scmp.ne.s32.totalorder %s857_s13, %s853_s12 }
   0x9   : > { %s1244_s22 = smov (%p26_p0, %s25_s22), 0  ;;  %s1246_s23 = smov (!%p26_p0, %s28_s23), %s877_s18 }
   0xa   : > { %s103_s24 = ssub.s32 %s873_s17, %s1244_s22  ;;  %p959_p3 = por %p118_p2, %p117_p1 }
   0xb   : > { %p30_p4 = scmp.ge.s32.totalorder %s1246_s23, 8  ;;  %p124_p6 = scmp.eq.s32.totalorder %s670_s21, 15 }
   0xc   : > { %p673_p7 = scmp.ge.s32.totalorder %s881_s19, 1  ;;  %p160_p9 = scmp.lt.s32.totalorder %s881_s19, 17 }
   0xd   : > { %s1248_s23 = smov (%p30_p4, %s1246_s23), 0  ;;  %p968_p8 = por %p124_p6, %p123_p5 }
   0xe   : > { %s102_s27 = ssub.s32 %s877_s18, %s1248_s23  ;;  %s107_s28 = sadd.s32 1, %s861_s14 }
   0xf   : > { %s104_s29 = sor.u32 %s103_s24, %s102_s27  ;;  %p161_p10 = pnand %p673_p7, %p160_p9 }
  0x10   : > { %p105_p11 = scmp.eq.s32.totalorder %s104_s29, 0  ;;  %p188_p12 = scmp.lt.s32.totalorder (!%p161_p10), %s869_s16, 7 }
  0x11   : > { %164 = sbr.rel (%p161_p10) target bundleno = 280 (0x118), region = 32  ;;  %p190_p13 = scmp.lt.s32.totalorder (!%p161_p10), %s865_s15, 1 }
  0x12   : > { %s977_s30 = scalar_select %p105_p11, %s861_s14, %s107_s28  }
  0x13   : > { %s695_s10 = sshll.u32 (!%p161_p10), %s865_s15, 5  ;;  %s696_s11 = sshll.u32 (!%p161_p10), %s869_s16, 6 }
  0x16   : > { %v883_v0 = vmov 0.0   ;;  %s189_s4 = scalar_select %p188_p12, %s869_s16, 7  ;;  %v884_v1 = vmov 0   ;;  %v225_v2 = vld [vmem:[%s1232_s2 + $0x10] sm:$0xff]  ;;  %v223_v3 = vld [vmem:[%s1232_s2] sm:$0xff]  ;;  %vm368_vm0 = vcmask 1043456  }
  0x17   : > { %439 = vmatprep.mubr.f32.mxu0 %v883_v0  ;;  %487 = vmatprep.mubr.f32.mxu1 %v883_v0  ;;  %s191_s5 = scalar_select %p190_p13, %s865_s15, 1  ;;  %v197_v14 = vld [vmem:[%s1231_s1] sm:$0xff]  ;;  %vm319_vm1 = vcmask 293888   ;;  %v226_v16 = vld [vmem:[%s1232_s2 + $0x18] sm:$0xff]  ;;  %v224_v17 = vld [vmem:[%s1232_s2 + $0x8] sm:$0xff] }
  0x18   : > { %788 = vset.pattern.permute.xlu1 %v884_v1  ;;  %787 = vset.pattern.permute.xlu0 %v884_v1  ;;  %s711_s6 = smul.u32 20, %s189_s4  ;;  %v205_v15 = vld [vmem:[%s1231_s1 + $0x40] sm:$0xff]  ;;  %v198_v18 = vld [vmem:[%s1231_s1 + $0x8] sm:$0xff]  ;;  %v199_v22 = vld [vmem:[%s1231_s1 + $0x10] sm:$0xff]  ;;  %s885_s4 = smov [#allocation2]  }
  0x19   : > { %s710_s7 = smul.u32 10, %s191_s5  ;;  %251 = vperm.xlu1 %788, %v225_v2   ;;  %241 = vperm.xlu0 %787, %v223_v3   ;;  %v206_v19 = vld [vmem:[%s1231_s1 + $0x48] sm:$0xff]  ;;  %v227_v21 = vld [vmem:[%s1232_s2 + $0x20] sm:$0xff]  ;;  %v207_v23 = vld [vmem:[%s1231_s1 + $0x50] sm:$0xff]  ;;  %s793_s5 = sshll.u32 %s885_s4, 4  ;;  %s794_s5 = int_to_ptr.vmem [resolvable:$false] %s793_s5 }
  0x1a   : > { %v228_v20 = vld [vmem:[%s1232_s2 + $0x28] sm:$0xff]  ;;  %v230_v24 = vld [vmem:[%s1232_s2 + $0x38] sm:$0xff]  ;;  %v229_v25 = vld [vmem:[%s1232_s2 + $0x30] sm:$0xff] }
  0x1b   : > { %s194_s20 = sadd.s32 %s711_s6, %s710_s7  ;;  %v200_v26 = vld [vmem:[%s1231_s1 + $0x18] sm:$0xff]  ;;  %v232_v28 = vld [vmem:[%s1232_s2 + $0x48] sm:$0xff]  ;;  %v231_v29 = vld [vmem:[%s1232_s2 + $0x40] sm:$0xff]  ;;  %s185_s7 = sand.u32 1, %s857_s13  }
  0x1c   : > { %s675_s21 = sshll.u32 %s194_s20, 3  ;;  %v208_v27 = vld [vmem:[%s1231_s1 + $0x58] sm:$0xff]  ;;  %v201_v30 = vld [vmem:[%s1231_s1 + $0x20] sm:$0xff]  ;;  %v233_v33 = vld [vmem:[%s1232_s2 + $0x50] sm:$0xff]  ;;  %s674_s8 = sshll.u32 %s185_s7, 8 }
  0x1d   : > { %s196_s28 = scalar_lea.vmem %s1230_s0, %s675_s21  ;;  %256 = vperm.xlu1 %788, %v226_v16   ;;  %246 = vperm.xlu0 %787, %v224_v17   ;;  %v209_v31 = vld [vmem:[%s1231_s1 + $0x60] sm:$0xff]  ;;  %v234_v32 = vld [vmem:[%s1232_s2 + $0x58] sm:$0xff]  ;;  %v202_v34 = vld [vmem:[%s1231_s1 + $0x28] sm:$0xff]  ;;  %s1125_s9 = scalar_lea.vmem [#allocation2], %s674_s8 }
  0x1e   : > { %v222_v4 = vld [vmem:[%s196_s28 + $0x48] sm:$0xf]  ;;  %v221_v5 = vld [vmem:[%s196_s28 + $0x40] sm:$0xf]  ;;  %v220_v6 = vld [vmem:[%s196_s28 + $0x38] sm:$0xff]  ;;  %s581_s20 = sadd.s32 %s696_s11, %s695_s10  ;;  %s584_s16 = sshll.u32 %s1125_s9, 4  ;;  %s1170_s16 = int_to_ptr.vmem [resolvable:$true] %s584_s16 }
  0x1f   : > { %676 = vmatprep.subr.msk.mxu0 %vm368_vm0, %v222_v4  ;;  %700 = vmatprep.subr.msk.mxu1 %vm368_vm0, %v222_v4  ;;  %v219_v7 = vld [vmem:[%s196_s28 + $0x30] sm:$0xff]  ;;  %v218_v8 = vld [vmem:[%s196_s28 + $0x28] sm:$0xff]  ;;  %v217_v9 = vld [vmem:[%s196_s28 + $0x20] sm:$0xff]  ;;  %s697_s15 = sshll.u32 %s581_s20, 7  ;;  %s789_s29 = scalar_lea.vmem %s1170_s16, 4096 }
  0x20   : > { %677 = vmatpush1.msk.msra.mxu0 %vm368_vm0, %v221_v5  ;;  %705 = vmatpush1.msk.msra.mxu1 %vm368_vm0, %v221_v5  ;;  %v216_v10 = vld [vmem:[%s196_s28 + $0x18] sm:$0xff]  ;;  %v215_v11 = vld [vmem:[%s196_s28 + $0x10] sm:$0xff]  ;;  %v214_v12 = vld [vmem:[%s196_s28 + $0x8] sm:$0xff]  ;;  %s1168_s27 = scalar_lea.hbm %s1233_s3, %s697_s15  ;;  %p790_p0 = scmp.ne.s32.totalorder %s1170_s16, %s789_s29 }
  0x21   : > { %399 = vmatprep.subr.mxu0 %v220_v6  ;;  %701 = vmatprep.subr.mxu1 %v220_v6  ;;  %v213_v13 = vld [vmem:[%s196_s28] sm:$0xff]  ;;  %v210_v35 = vld [vmem:[%s1231_s1 + $0x68] sm:$0xff]  ;;  %v203_v38 = vld [vmem:[%s1231_s1 + $0x30] sm:$0xff]  ;;  %s1179_s28 = scalar_lea.sflag [#allocation3], %s185_s7  ;;  %s795_s6 = scalar_lea.vmem %s794_s5, 8192 }
  0x22   : > { %400 = vmatpush1.msra.mxu0 %v219_v7  ;;  %706 = vmatpush1.msra.mxu1 %v219_v7  ;;  %v236_v36 = vld [vmem:[%s1232_s2 + $0x68] sm:$0xff]  ;;  %v235_v37 = vld [vmem:[%s1232_s2 + $0x60] sm:$0xff]  ;;  %v211_v39 = vld [vmem:[%s1231_s1 + $0x70] sm:$0xff]  ;;  %p791_p1 = pnand %p790_p0, %p959_p3  ;;  %p796_p4 = scmp.lt.s32.totalorder %s1170_s16, %s794_s5 }
  0x23   : > { %401 = vmatprep.subr.mxu0 %v218_v8  ;;  %702 = vmatprep.subr.mxu1 %v218_v8  ;;  %v238_v40 = vld [vmem:[%s1232_s2 + $0x78] sm:$0xff]  ;;  %v237_v41 = vld [vmem:[%s1232_s2 + $0x70] sm:$0xff]  ;;  %p797_p5 = scmp.lt.s32.totalorder %s795_s6, %s789_s29 }
  0x24   : > { %402 = vmatpush1.msra.mxu0 %v217_v9  ;;  %707 = vmatpush1.msra.mxu1 %v217_v9  ;;  %v204_v42 = vld [vmem:[%s1231_s1 + $0x38] sm:$0xff]  ;;  %p792_p2 = pneg %p791_p1 }
  0x25   : > { %403 = vmatprep.subr.mxu0 %v216_v10  ;;  %703 = vmatprep.subr.mxu1 %v216_v10  ;;  %v212_v43 = vld [vmem:[%s1231_s1 + $0x78] sm:$0xff]  ;;  %p798_p6 = por %p797_p5, %p796_p4 }
  0x26   : > { %404 = vmatpush1.msra.mxu0 %v215_v11  ;;  %708 = vmatpush1.msra.mxu1 %v215_v11 }
  0x27   : > { %405 = vmatprep.subr.mxu0 %v214_v12  ;;  %704 = vmatprep.subr.mxu1 %v214_v12  ;;  %p799_p7 = pnand %p798_p6, %p792_p2 }
  0x28   : > { %406 = vmatpush1.msra.mxu0 %v213_v13  ;;  %709 = vmatpush1.msra.mxu1 %v213_v13 }
  0x29   : > { %678 = vmatmul.mubr.msk.f32.vlgmr.msra.gmra.mxu0 %vm319_vm1, %v197_v14  ;;  %686 = vmatmul.mubr.msk.f32.vlgmr.msra.gmra.mxu1 %vm319_vm1, %v205_v15 }
  0x2a   : > { %445 = vmatprep.mubr.f32.mxu0 %v883_v0  ;;  %493 = vmatprep.mubr.f32.mxu1 %v883_v0 }
  0x2b   : > { %266 = vperm.xlu1 %788, %v228_v20   ;;  %261 = vperm.xlu0 %787, %v227_v21  }
  0x2d   : > { %679 = vmatmul.mubr.msk.f32.gmra.mxu0 %vm319_vm1, %v198_v18  ;;  %687 = vmatmul.mubr.msk.f32.gmra.mxu1 %vm319_vm1, %v206_v19 }
  0x2e   : > { %451 = vmatprep.mubr.f32.mxu0 %v883_v0  ;;  %499 = vmatprep.mubr.f32.mxu1 %v883_v0 }
  0x2f   : > { %276 = vperm.xlu1 %788, %v230_v24   ;;  %271 = vperm.xlu0 %787, %v229_v25  }
  0x31   : > { %680 = vmatmul.mubr.msk.f32.gmra.mxu0 %vm319_vm1, %v199_v22  ;;  %688 = vmatmul.mubr.msk.f32.gmra.mxu1 %vm319_vm1, %v207_v23 }
  0x32   : > { %457 = vmatprep.mubr.f32.mxu0 %v883_v0  ;;  %505 = vmatprep.mubr.f32.mxu1 %v883_v0 }
  0x33   : > { %286 = vperm.xlu1 %788, %v232_v28   ;;  %281 = vperm.xlu0 %787, %v231_v29  }
  0x35   : > { %681 = vmatmul.mubr.msk.f32.gmra.mxu0 %vm319_vm1, %v200_v26  ;;  %689 = vmatmul.mubr.msk.f32.gmra.mxu1 %vm319_vm1, %v208_v27 }
  0x36   : > { %463 = vmatprep.mubr.f32.mxu0 %v883_v0  ;;  %511 = vmatprep.mubr.f32.mxu1 %v883_v0 }
  0x37   : > { %296 = vperm.xlu1 %788, %v234_v32   ;;  %291 = vperm.xlu0 %787, %v233_v33  }
  0x39   : > { %682 = vmatmul.mubr.msk.f32.gmra.mxu0 %vm319_vm1, %v201_v30  ;;  %690 = vmatmul.mubr.msk.f32.gmra.mxu1 %vm319_vm1, %v209_v31 }
  0x3a   : > { %469 = vmatprep.mubr.f32.mxu0 %v883_v0  ;;  %517 = vmatprep.mubr.f32.mxu1 %v883_v0 }
  0x3b   : > { %306 = vperm.xlu1 %788, %v236_v36   ;;  %301 = vperm.xlu0 %787, %v235_v37  }
  0x3d   : > { %683 = vmatmul.mubr.msk.f32.gmra.mxu0 %vm319_vm1, %v202_v34  ;;  %691 = vmatmul.mubr.msk.f32.gmra.mxu1 %vm319_vm1, %v210_v35 }
  0x3e   : > { %475 = vmatprep.mubr.f32.mxu0 %v883_v0  ;;  %523 = vmatprep.mubr.f32.mxu1 %v883_v0 }
  0x3f   : > { %316 = vperm.xlu1 %788, %v238_v40   ;;  %311 = vperm.xlu0 %787, %v237_v41  }
  0x41   : > { %684 = vmatmul.mubr.msk.f32.gmra.mxu0 %vm319_vm1, %v203_v38  ;;  %692 = vmatmul.mubr.msk.f32.gmra.mxu1 %vm319_vm1, %v211_v39 }
  0x42   : > { %481 = vmatprep.mubr.f32.mxu0 %v883_v0  ;;  %529 = vmatprep.mubr.f32.mxu1 %v883_v0 }
  0x45   : > { %685 = vmatmul.mubr.msk.f32.gmra.mxu0 %vm319_vm1, %v204_v42  ;;  %693 = vmatmul.mubr.msk.f32.gmra.mxu1 %vm319_vm1, %v212_v43 }
  0x94   : > { %v242_v44 = vpop.permute.xlu0 %241  ;;  %v252_v45 = vpop.permute.xlu1 %251 }
  0x98   : > { %v247_v46 = vpop.permute.xlu0 %246  ;;  %v257_v47 = vpop.permute.xlu1 %256 }
  0xa6   : > { %v1114_v48 = vpop.permute.xlu0 %261  ;;  %v1116_v49 = vpop.permute.xlu1 %266 }
  0xaa   : > { %v1118_v50 = vpop.permute.xlu0 %271  ;;  %v1121_v51 = vpop.permute.xlu1 %276 }
  0xae   : > { %v282_v52 = vpop.permute.xlu0 %281  ;;  %v287_v59 = vpop.permute.xlu1 %286 }
  0xb2   : > { %v292_v4 = vpop.permute.xlu0 %291  ;;  %v297_v13 = vpop.permute.xlu1 %296 }
  0xb6   : > { %v302_v22 = vpop.permute.xlu0 %301  ;;  %v307_v31 = vpop.permute.xlu1 %306 }
  0xba   : > { %v312_v40 = vpop.permute.xlu0 %311 }
  0xe9   : > { %v441_v53 = vpop.f32.mrf.mxu0  ;;  %v489_v54 = vpop.f32.mrf.mxu1 }
  0xea   : > { %v442_v55 = vadd.f32 %v441_v53, %v242_v44  ;;  %v490_v56 = vadd.f32 %v489_v54, %v282_v52 }
  0xeb   : > { %v443_v57 = vpop.f32.mrf.mxu0  ;;  %v491_v58 = vpop.f32.mrf.mxu1 }
  0xec   : > { %536 = vst [vmem:[%s1125_s9] sm:$0xff] %v442_v55  ;;  %552 = vst [vmem:[%s1125_s9 + $0x80] sm:$0xff] %v490_v56  ;;  %v444_v60 = vadd.f32 %v443_v57, %v242_v44  ;;  %v492_v61 = vadd.f32 %v491_v58, %v282_v52  ;;  %v317_v52 = vpop.permute.xlu1 %316 }
  0xed   : > { %v447_v62 = vpop.f32.mrf.mxu0  ;;  %v495_v63 = vpop.f32.mrf.mxu1 }
  0xee   : > { %537 = vst [vmem:[%s1125_s9 + $0x8] sm:$0xff] %v444_v60  ;;  %553 = vst [vmem:[%s1125_s9 + $0x88] sm:$0xff] %v492_v61  ;;  %v448_v0 = vadd.f32 %v447_v62, %v247_v46  ;;  %v496_v1 = vadd.f32 %v495_v63, %v287_v59 }
  0xef   : > { %v449_v2 = vpop.f32.mrf.mxu0  ;;  %v497_v3 = vpop.f32.mrf.mxu1 }
  0xf0   : > { %538 = vst [vmem:[%s1125_s9 + $0x10] sm:$0xff] %v448_v0  ;;  %554 = vst [vmem:[%s1125_s9 + $0x90] sm:$0xff] %v496_v1  ;;  %v450_v5 = vadd.f32 %v449_v2, %v247_v46  ;;  %v498_v6 = vadd.f32 %v497_v3, %v287_v59 }
  0xf1   : > { %v453_v7 = vpop.f32.mrf.mxu0  ;;  %v501_v8 = vpop.f32.mrf.mxu1 }
  0xf2   : > { %539 = vst [vmem:[%s1125_s9 + $0x18] sm:$0xff] %v450_v5  ;;  %555 = vst [vmem:[%s1125_s9 + $0x98] sm:$0xff] %v498_v6  ;;  %v454_v9 = vadd.f32 %v453_v7, %v252_v45  ;;  %v502_v10 = vadd.f32 %v501_v8, %v292_v4 }
  0xf3   : > { %v455_v11 = vpop.f32.mrf.mxu0  ;;  %v503_v12 = vpop.f32.mrf.mxu1 }
  0xf4   : > { %540 = vst [vmem:[%s1125_s9 + $0x20] sm:$0xff] %v454_v9  ;;  %556 = vst [vmem:[%s1125_s9 + $0xa0] sm:$0xff] %v502_v10  ;;  %v456_v14 = vadd.f32 %v455_v11, %v252_v45  ;;  %v504_v15 = vadd.f32 %v503_v12, %v292_v4 }
  0xf5   : > { %v459_v16 = vpop.f32.mrf.mxu0  ;;  %v507_v17 = vpop.f32.mrf.mxu1 }
  0xf6   : > { %541 = vst [vmem:[%s1125_s9 + $0x28] sm:$0xff] %v456_v14  ;;  %557 = vst [vmem:[%s1125_s9 + $0xa8] sm:$0xff] %v504_v15  ;;  %v460_v18 = vadd.f32 %v459_v16, %v257_v47  ;;  %v508_v19 = vadd.f32 %v507_v17, %v297_v13 }
  0xf7   : > { %v461_v20 = vpop.f32.mrf.mxu0  ;;  %v509_v21 = vpop.f32.mrf.mxu1 }
  0xf8   : > { %542 = vst [vmem:[%s1125_s9 + $0x30] sm:$0xff] %v460_v18  ;;  %558 = vst [vmem:[%s1125_s9 + $0xb0] sm:$0xff] %v508_v19  ;;  %v462_v23 = vadd.f32 %v461_v20, %v257_v47  ;;  %v510_v24 = vadd.f32 %v509_v21, %v297_v13 }
  0xf9   : > { %v465_v25 = vpop.f32.mrf.mxu0  ;;  %v513_v26 = vpop.f32.mrf.mxu1 }
  0xfa   : > { %543 = vst [vmem:[%s1125_s9 + $0x38] sm:$0xff] %v462_v23  ;;  %559 = vst [vmem:[%s1125_s9 + $0xb8] sm:$0xff] %v510_v24  ;;  %v466_v27 = vadd.f32 %v465_v25, %v1114_v48  ;;  %v514_v28 = vadd.f32 %v513_v26, %v302_v22 }
  0xfb   : > { %v467_v29 = vpop.f32.mrf.mxu0  ;;  %v515_v30 = vpop.f32.mrf.mxu1 }
  0xfc   : > { %544 = vst [vmem:[%s1125_s9 + $0x40] sm:$0xff] %v466_v27  ;;  %560 = vst [vmem:[%s1125_s9 + $0xc0] sm:$0xff] %v514_v28  ;;  %v468_v32 = vadd.f32 %v467_v29, %v1114_v48  ;;  %v516_v33 = vadd.f32 %v515_v30, %v302_v22 }
  0xfd   : > { %v471_v34 = vpop.f32.mrf.mxu0  ;;  %v519_v35 = vpop.f32.mrf.mxu1 }
  0xfe   : > { %545 = vst [vmem:[%s1125_s9 + $0x48] sm:$0xff] %v468_v32  ;;  %561 = vst [vmem:[%s1125_s9 + $0xc8] sm:$0xff] %v516_v33  ;;  %v472_v36 = vadd.f32 %v471_v34, %v1116_v49  ;;  %v520_v37 = vadd.f32 %v519_v35, %v307_v31 }
  0xff   : > { %v473_v38 = vpop.f32.mrf.mxu0  ;;  %v521_v39 = vpop.f32.mrf.mxu1 }
 0x100   : > { %546 = vst [vmem:[%s1125_s9 + $0x50] sm:$0xff] %v472_v36  ;;  %562 = vst [vmem:[%s1125_s9 + $0xd0] sm:$0xff] %v520_v37  ;;  %v474_v41 = vadd.f32 %v473_v38, %v1116_v49  ;;  %v522_v42 = vadd.f32 %v521_v39, %v307_v31 }
 0x101   : > { %v477_v43 = vpop.f32.mrf.mxu0  ;;  %v525_v44 = vpop.f32.mrf.mxu1 }
 0x102   : > { %547 = vst [vmem:[%s1125_s9 + $0x58] sm:$0xff] %v474_v41  ;;  %563 = vst [vmem:[%s1125_s9 + $0xd8] sm:$0xff] %v522_v42  ;;  %v478_v45 = vadd.f32 %v477_v43, %v1118_v50  ;;  %v526_v46 = vadd.f32 %v525_v44, %v312_v40 }
 0x103   : > { %v479_v47 = vpop.f32.mrf.mxu0  ;;  %v527_v48 = vpop.f32.mrf.mxu1 }
 0x104   : > { %548 = vst [vmem:[%s1125_s9 + $0x60] sm:$0xff] %v478_v45  ;;  %564 = vst [vmem:[%s1125_s9 + $0xe0] sm:$0xff] %v526_v46  ;;  %v480_v49 = vadd.f32 %v479_v47, %v1118_v50  ;;  %v528_v53 = vadd.f32 %v527_v48, %v312_v40 }
 0x105   : > { %v483_v54 = vpop.f32.mrf.mxu0  ;;  %v531_v55 = vpop.f32.mrf.mxu1 }
 0x106   : > { %549 = vst [vmem:[%s1125_s9 + $0x68] sm:$0xff] %v480_v49  ;;  %565 = vst [vmem:[%s1125_s9 + $0xe8] sm:$0xff] %v528_v53  ;;  %v484_v56 = vadd.f32 %v483_v54, %v1121_v51  ;;  %v532_v57 = vadd.f32 %v531_v55, %v317_v52 }
 0x107   : > { %v485_v58 = vpop.f32.mrf.mxu0  ;;  %v533_v59 = vpop.f32.mrf.mxu1 }
 0x108   : > { %550 = vst [vmem:[%s1125_s9 + $0x70] sm:$0xff] %v484_v56  ;;  %566 = vst [vmem:[%s1125_s9 + $0xf0] sm:$0xff] %v532_v57  ;;  %v486_v50 = vadd.f32 %v485_v58, %v1121_v51  ;;  %v534_v60 = vadd.f32 %v533_v59, %v317_v52 }
 0x10a   : > { %551 = vst [vmem:[%s1125_s9 + $0x78] sm:$0xff] %v486_v50  ;;  %567 = vst [vmem:[%s1125_s9 + $0xf8] sm:$0xff] %v534_v60 }
 0x10b   : > { %802 = shalt.err (!%p799_p7)
}
 0x10c   : > { %s803_s7 = scalar_lea.hbm %s1168_s27, 4096  ;;  %s807_s10 = scalar_lea.hbm %s1233_s3, 65536 }
 0x10d   : > { %p804_p9 = scmp.ne.s32.totalorder %s1168_s27, %s803_s7  ;;  %p808_p12 = scmp.lt.s32.totalorder %s1168_s27, %s1233_s3 }
 0x10e   : > { %p809_p13 = scmp.lt.s32.totalorder %s807_s10, %s803_s7 }
 0x10f   : > { %p805_p10 = pnand %p804_p9, %p959_p3 }
 0x110   : > { %p810_p0 = por %p809_p13, %p808_p12 }
 0x111   : > { %p806_p11 = pneg %p805_p10 }
 0x113   : > { %p811_p1 = pnand %p810_p0, %p806_p11 }
 0x115   : > { %814 = shalt.err (!%p811_p1)
}
 0x116   : > { %s886_s15 = smov 256   ;;  %s887_s21 = smov 16  }
 0x117   : > { %712 = dma.vmem_to_hbm [thread:$0]  (%p959_p3), %s1170_s16, 4096, %s1168_s27, %s1179_s28, %s886_s15, %s886_s15, %s887_s21  }
 0x118 PF: > { %p718_p2 = scmp.ge.s32.totalorder %s881_s19, 2  ;;  %s599_s24 = sand.u32 1, %s853_s12  }
 0x119   : > { %s600_s29 = scalar_lea.sflag [#allocation3], %s599_s24 }
 0x11a   : > { %p715_p4 = pnand %p718_p2, %p968_p8 }
 0x11c   : > { %p716_p5 = pneg %p715_p4 }
 0x11e   : > { %848 = dma.done.wait (%p716_p5), %s600_s29, 4096  }
 0x11f   : > { %850 = vsyncadd (%p716_p5), %s600_s29, 4294963200  ;;  %s16_s19 = sadd.s32 1, %s881_s19   ;;  %s1236_s12 = smov %s857_s13 }
 0x120   : > { %p13_p6 = scmp.ge.s32.totalorder %s16_s19, 18   ;;  %s1237_s13 = smov %s861_s14 }
 0x121   : > { %s1238_s14 = smov %s977_s30  ;;  %s1239_s15 = smov %s873_s17 }
 0x122   : > { %s1240_s16 = smov %s877_s18  ;;  %s1241_s17 = smov %s1244_s22 }
 0x123   : > { %s1242_s18 = smov %s1248_s23  ;;  %15 = sbr.rel (!%p13_p6) target bundleno = 5 (0x5), region = 67 }
 0x128   :  { %605 = vsyncpa [#allocation3], 1 }
 0x129   :  { %607 = vsyncpa [#allocation3 + $0x1], 1 }

</bundles_post_ra>
